<compile_context>
chip_gen: v5e
topology: v5e:2x2
jax: 0.10.0
libtpu: 0.0.40
codegen_flags: <defaults>
</compile_context>

<pallas_src>
import functools

import jax
import jax.numpy as jnp
from jax.experimental import pallas as pl
from jax.experimental.pallas import tpu as pltpu


def _round_up(x, m):
    return ((x + m - 1) // m) * m


def _embedding_kernel(x_ref, w1_ref, b1_ref, w2_ref, b2_ref, o_ref):
    # x_ref : (1, Cin_pad, tile_n)   one batch element, one tile of points
    # w1_ref: (Cmid, Cin_pad)        conv1 weight with BN1 scale folded in
    # b1_ref: (Cmid, 1)              BN1 bias
    # w2_ref: (Cout, Cmid)           conv2 weight with BN2 scale folded in
    # b2_ref: (Cout, 1)              BN2 bias
    # o_ref : (1, Cout, tile_n)
    x = x_ref[0]                                              # (Cin_pad, tile_n)

    h = jnp.dot(w1_ref[...], x, preferred_element_type=jnp.float32)
    h = jnp.maximum(h + b1_ref[...], 0.0)                     # f32 epilogue (VPU)

    y = jnp.dot(w2_ref[...], h.astype(w2_ref.dtype),
                preferred_element_type=jnp.float32)
    y = jnp.maximum(y + b2_ref[...], 0.0)

    o_ref[0] = y.astype(o_ref.dtype)


def embedding_forward(x, params, *, tile_n=4096, use_bf16=True,
                      out_dtype=jnp.float32):
    """x: [B, C_in, N] float32 -> [B, C_out, N] `out_dtype` (eval-mode BN)."""
    w1 = params["w1"]            # (Cmid, Cin)   conv1 weight (k=1 squeezed)
    w2 = params["w2"]            # (Cout, Cmid)  conv2 weight
    eps = 1e-5

    # Fold BN (inference) into per-output-channel scale/bias, then fold the
    # scale into the weight rows (one-time transform, numerically equivalent).
    s1 = params["bn1_gamma"] * jax.lax.rsqrt(params["bn1_var"] + eps)
    b1 = params["bn1_beta"] - params["bn1_mean"] * s1
    s2 = params["bn2_gamma"] * jax.lax.rsqrt(params["bn2_var"] + eps)
    b2 = params["bn2_beta"] - params["bn2_mean"] * s2

    B, Cin, N = x.shape
    Cmid = w1.shape[0]
    Cout = w2.shape[0]

    compute_dtype = jnp.bfloat16 if use_bf16 else jnp.float32

    # Tile sizing: if a single tile covers N, use N itself (block dim == full
    # array dim -> always legal, no masking).  Otherwise use a multiple of 256
    # (fills the 256-wide MXU on v6e/v7x, lane-dense stores); the partial last
    # block is masked by Pallas.
    if tile_n >= N:
        tile_n = N
    else:
        tile_n = max(256, (min(tile_n, N) // 256) * 256)
    grid_n = pl.cdiv(N, tile_n)

    # bf16 packs two rows per sublane -> pad Cin to 16 for a clean packed
    # layout of the x load; 8 suffices for f32.
    Cin_pad = _round_up(Cin, 16 if use_bf16 else 8)

    # Channel pad only (no N pad, no trailing slice on the 128-channel output).
    xp = jnp.pad(x, ((0, 0), (0, Cin_pad - Cin), (0, 0))).astype(compute_dtype)

    w1f = jnp.pad(w1 * s1[:, None],
                  ((0, 0), (0, Cin_pad - Cin))).astype(compute_dtype)
    w2f = (w2 * s2[:, None]).astype(compute_dtype)
    b1r = b1.reshape(Cmid, 1).astype(jnp.float32)
    b2r = b2.reshape(Cout, 1).astype(jnp.float32)

    # NOTE: folding b1 into w1 via a constant-1 input channel is possible but
    # optional (VPU epilogue is not the bottleneck); kept as explicit bias.

    grid = (grid_n, B)   # long N-tile axis first -> clean megacore sharding

    out_itemsize = jnp.dtype(out_dtype).itemsize
    cost = pl.CostEstimate(
        flops=2 * B * N * (Cmid * Cin_pad + Cout * Cmid),
        transcendentals=0,
        bytes_accessed=(xp.size * xp.dtype.itemsize
                        + B * Cout * N * out_itemsize
                        + w1f.size * w1f.dtype.itemsize
                        + w2f.size * w2f.dtype.itemsize
                        + (b1r.size + b2r.size) * 4),
    )

    out = pl.pallas_call(
        _embedding_kernel,
        out_shape=jax.ShapeDtypeStruct((B, Cout, N), out_dtype),
        grid_spec=pltpu.PrefetchScalarGridSpec(
            num_scalar_prefetch=0,
            grid=grid,
            in_specs=[
                pl.BlockSpec((1, Cin_pad, tile_n), lambda j, b: (b, 0, j)),  # x
                pl.BlockSpec((Cmid, Cin_pad), lambda j, b: (0, 0)),          # w1
                pl.BlockSpec((Cmid, 1), lambda j, b: (0, 0)),                # b1
                pl.BlockSpec((Cout, Cmid), lambda j, b: (0, 0)),             # w2
                pl.BlockSpec((Cout, 1), lambda j, b: (0, 0)),                # b2
            ],
            out_specs=pl.BlockSpec((1, Cout, tile_n), lambda j, b: (b, 0, j)),
        ),
        compiler_params=pltpu.CompilerParams(
            dimension_semantics=("parallel", "parallel")),
        cost_estimate=cost,
    )(xp, w1f, b1r, w2f, b2r)

    return out


def init_params(key, in_channels=3, out_channels=128):
    ks = jax.random.split(key, 8)
    bound1 = 1.0 / jnp.sqrt(in_channels)
    bound2 = 1.0 / jnp.sqrt(out_channels)
    return {
        "w1": jax.random.uniform(ks[0], (out_channels, in_channels),
                                 jnp.float32, -bound1, bound1),
        "w2": jax.random.uniform(ks[1], (out_channels, out_channels),
                                 jnp.float32, -bound2, bound2),
        "bn1_gamma": 1.0 + 0.1 * jax.random.normal(ks[2], (out_channels,)),
        "bn1_beta": 0.1 * jax.random.normal(ks[3], (out_channels,)),
        "bn1_mean": 0.05 * jax.random.normal(ks[4], (out_channels,)),
        "bn1_var": jnp.abs(1.0 + 0.1 * jax.random.normal(ks[5], (out_channels,))),
        "bn2_gamma": 1.0 + 0.1 * jax.random.normal(ks[6], (out_channels,)),
        "bn2_beta": 0.1 * jax.random.normal(ks[7], (out_channels,)),
        "bn2_mean": jnp.zeros((out_channels,), jnp.float32),
        "bn2_var": jnp.ones((out_channels,), jnp.float32),
    }


def reference_forward(x, params):
    """Pure-JAX reference (eval-mode BN) for correctness check."""
    eps = 1e-5
    h = jnp.einsum("oc,bcn->bon", params["w1"], x)
    h = (h - params["bn1_mean"][None, :, None]) / jnp.sqrt(
        params["bn1_var"][None, :, None] + eps)
    h = h * params["bn1_gamma"][None, :, None] + params["bn1_beta"][None, :, None]
    h = jnp.maximum(h, 0.0)
    y = jnp.einsum("oc,bcn->bon", params["w2"], h)
    y = (y - params["bn2_mean"][None, :, None]) / jnp.sqrt(
        params["bn2_var"][None, :, None] + eps)
    y = y * params["bn2_gamma"][None, :, None] + params["bn2_beta"][None, :, None]
    return jnp.maximum(y, 0.0)


if __name__ == "__main__":
    key = jax.random.PRNGKey(0)
    kp, kx = jax.random.split(key)

    in_channels, out_channels = 3, 128
    B, N = 2, 300  # small shapes; N deliberately NOT a multiple of the tile

    params = init_params(kp, in_channels, out_channels)
    x = jax.random.normal(kx, (B, in_channels, N), jnp.float32)

    ref = reference_forward(x, params)

    # 1) f32 path, single full-N block: exact (tight tolerance).
    fwd_f32 = jax.jit(functools.partial(embedding_forward,
                                        use_bf16=False, out_dtype=jnp.float32))
    out_f32 = jax.block_until_ready(fwd_f32(x, params))
    assert out_f32.shape == (B, out_channels, N), out_f32.shape
    assert jnp.allclose(out_f32, ref, atol=1e-4, rtol=1e-4), (
        float(jnp.max(jnp.abs(out_f32 - ref))))

    # 2) bf16-matmul / f32-accumulate path with an explicit small tile so the
    #    last block is partial (exercises masked stores): loosened tolerance.
    fwd_bf16 = jax.jit(functools.partial(embedding_forward, tile_n=256,
                                         use_bf16=True, out_dtype=jnp.float32))
    out_bf16 = jax.block_until_ready(fwd_bf16(x, params))
    assert out_bf16.shape == (B, out_channels, N), out_bf16.shape
    assert jnp.allclose(out_bf16, ref, atol=5e-2, rtol=5e-2), (
        float(jnp.max(jnp.abs(out_bf16 - ref))))

    # 3) bf16-output path (halves the dominant HBM writeback stream).
    fwd_bf16o = jax.jit(functools.partial(embedding_forward, tile_n=256,
                                          use_bf16=True, out_dtype=jnp.bfloat16))
    out_bf16o = jax.block_until_ready(fwd_bf16o(x, params))
    assert out_bf16o.dtype == jnp.bfloat16
    assert jnp.allclose(out_bf16o.astype(jnp.float32), ref,
                        atol=1e-1, rtol=1e-1), (
        float(jnp.max(jnp.abs(out_bf16o.astype(jnp.float32) - ref))))

    print("KERNEL_OK")
</pallas_src>

<mosaic_0001>
module attributes {stable_mosaic.version = 11 : i64} {
  func.func @_embedding_kernel(%arg0: i32, %arg1: i32, %arg2: memref<1x8x300xf32, #tpu.memory_space<vmem>>, %arg3: memref<128x8xf32, #tpu.memory_space<vmem>>, %arg4: memref<128x1xf32, #tpu.memory_space<vmem>>, %arg5: memref<128x128xf32, #tpu.memory_space<vmem>>, %arg6: memref<128x1xf32, #tpu.memory_space<vmem>>, %arg7: memref<1x128x300xf32, #tpu.memory_space<vmem>>) attributes {dimension_semantics = [#tpu.dimension_semantics<parallel>, #tpu.dimension_semantics<parallel>], iteration_bounds = array<i64: 1, 2>, scalar_prefetch = 0 : i64, scratch_operands = 0 : i64, tpu.core_type = #tpu.core_type<tc>, window_params = [{transform_indices = @transform_0, window_bounds = array<i64: 1, 8, 300>}, {pipeline_mode = #tpu.pipeline_mode<synchronous>, transform_indices = @transform_1, window_bounds = array<i64: 128, 8>}, {pipeline_mode = #tpu.pipeline_mode<synchronous>, transform_indices = @transform_2, window_bounds = array<i64: 128, 1>}, {pipeline_mode = #tpu.pipeline_mode<synchronous>, transform_indices = @transform_3, window_bounds = array<i64: 128, 128>}, {pipeline_mode = #tpu.pipeline_mode<synchronous>, transform_indices = @transform_4, window_bounds = array<i64: 128, 1>}, {transform_indices = @transform_5, window_bounds = array<i64: 1, 128, 300>}]} {
    %c0 = arith.constant 0 : index
    %c0_0 = arith.constant 0 : index
    %c0_1 = arith.constant 0 : index
    %0 = vector.load %arg2[%c0, %c0_0, %c0_1] : memref<1x8x300xf32, #tpu.memory_space<vmem>>, vector<1x8x300xf32>
    %1 = vector.shape_cast %0 : vector<1x8x300xf32> to vector<8x300xf32>
    %c0_2 = arith.constant 0 : index
    %c0_3 = arith.constant 0 : index
    %2 = vector.load %arg3[%c0_2, %c0_3] : memref<128x8xf32, #tpu.memory_space<vmem>>, vector<128x8xf32>
    %cst = arith.constant dense<0.000000e+00> : vector<128x300xf32>
    %3 = tpu.matmul %2, %1, %cst {dimension_numbers = #tpu.dot_dimension_numbers<[1], [0], [0], [1], [0, 0, 1, 1], [], []>} : vector<128x8xf32>, vector<8x300xf32>, vector<128x300xf32> -> vector<128x300xf32>
    %c0_4 = arith.constant 0 : index
    %c0_5 = arith.constant 0 : index
    %4 = vector.load %arg4[%c0_4, %c0_5] : memref<128x1xf32, #tpu.memory_space<vmem>>, vector<128x1xf32>
    %5 = vector.broadcast %4 : vector<128x1xf32> to vector<128x300xf32>
    %6 = arith.addf %3, %5 : vector<128x300xf32>
    %cst_6 = arith.constant 0.000000e+00 : f32
    %7 = vector.broadcast %cst_6 : f32 to vector<128x300xf32>
    %8 = arith.maximumf %6, %7 : vector<128x300xf32>
    %c0_7 = arith.constant 0 : index
    %c0_8 = arith.constant 0 : index
    %9 = vector.load %arg5[%c0_7, %c0_8] : memref<128x128xf32, #tpu.memory_space<vmem>>, vector<128x128xf32>
    %cst_9 = arith.constant dense<0.000000e+00> : vector<128x300xf32>
    %10 = tpu.matmul %9, %8, %cst_9 {dimension_numbers = #tpu.dot_dimension_numbers<[1], [0], [0], [1], [0, 0, 1, 1], [], []>} : vector<128x128xf32>, vector<128x300xf32>, vector<128x300xf32> -> vector<128x300xf32>
    %c0_10 = arith.constant 0 : index
    %c0_11 = arith.constant 0 : index
    %11 = vector.load %arg6[%c0_10, %c0_11] : memref<128x1xf32, #tpu.memory_space<vmem>>, vector<128x1xf32>
    %12 = vector.broadcast %11 : vector<128x1xf32> to vector<128x300xf32>
    %13 = arith.addf %10, %12 : vector<128x300xf32>
    %cst_12 = arith.constant 0.000000e+00 : f32
    %14 = vector.broadcast %cst_12 : f32 to vector<128x300xf32>
    %15 = arith.maximumf %13, %14 : vector<128x300xf32>
    %c0_13 = arith.constant 0 : index
    %c0_14 = arith.constant 0 : index
    %c0_15 = arith.constant 0 : index
    %16 = vector.load %arg7[%c0_13, %c0_14, %c0_15] : memref<1x128x300xf32, #tpu.memory_space<vmem>>, vector<1x128x300xf32>
    %17 = vector.shape_cast %16 : vector<1x128x300xf32> to vector<128x300xf32>
    %18 = vector.shape_cast %15 : vector<128x300xf32> to vector<1x128x300xf32>
    tpu.vector_store %arg7[%c0_13, %c0_14, %c0_15], %18 {strides = array<i32>} : memref<1x128x300xf32, #tpu.memory_space<vmem>>, vector<1x128x300xf32>,
    return
  }
  func.func @transform_0(%arg0: i32, %arg1: i32) -> (i32, i32, i32) {
    %c0_i32 = arith.constant 0 : i32
    %c0_i32_0 = arith.constant 0 : i32
    return %arg1, %c0_i32, %arg0 : i32, i32, i32
  }
  func.func @transform_1(%arg0: i32, %arg1: i32) -> (i32, i32) {
    %c0_i32 = arith.constant 0 : i32
    %c0_i32_0 = arith.constant 0 : i32
    %c0_i32_1 = arith.constant 0 : i32
    return %c0_i32, %c0_i32_0 : i32, i32
  }
  func.func @transform_2(%arg0: i32, %arg1: i32) -> (i32, i32) {
    %c0_i32 = arith.constant 0 : i32
    %c0_i32_0 = arith.constant 0 : i32
    %c0_i32_1 = arith.constant 0 : i32
    return %c0_i32, %c0_i32_0 : i32, i32
  }
  func.func @transform_3(%arg0: i32, %arg1: i32) -> (i32, i32) {
    %c0_i32 = arith.constant 0 : i32
    %c0_i32_0 = arith.constant 0 : i32
    %c0_i32_1 = arith.constant 0 : i32
    return %c0_i32, %c0_i32_0 : i32, i32
  }
  func.func @transform_4(%arg0: i32, %arg1: i32) -> (i32, i32) {
    %c0_i32 = arith.constant 0 : i32
    %c0_i32_0 = arith.constant 0 : i32
    %c0_i32_1 = arith.constant 0 : i32
    return %c0_i32, %c0_i32_0 : i32, i32
  }
  func.func @transform_5(%arg0: i32, %arg1: i32) -> (i32, i32, i32) {
    %c0_i32 = arith.constant 0 : i32
    %c0_i32_0 = arith.constant 0 : i32
    return %arg1, %c0_i32, %arg0 : i32, i32, i32
  }
}

</mosaic_0001>

<bundles_post_ra>
// kernel: embedding_forward.1
= control target key start
LH: loop header
LB: loop body
LE: loop exit
PB: predicated region body
PF: predicated region fallthrough
CT: control target
= control target key end

     0   :  { %s1306_s18 = smov 0   ;;  %s1308_s19 = smov 0   ;;  %s1999_s0 = inlined_call_operand.vmem [shape: f32[2,8,300], index: 0, kind: input, shape index: {}]   ;;  %s2000_s1 = inlined_call_operand.vmem [shape: f32[128,8], index: 1, kind: input, shape index: {}]   ;;  %s2001_s2 = inlined_call_operand.vmem [shape: f32[128,1], index: 2, kind: input, shape index: {}]   ;;  %s2002_s3 = inlined_call_operand.vmem [shape: f32[128,128], index: 3, kind: input, shape index: {}]   ;;  %s2003_s4 = inlined_call_operand.vmem [shape: f32[128,1], index: 4, kind: input, shape index: {}]   ;;  %s2004_s5 = inlined_call_operand.vmem [shape: f32[2,128,300], index: 5, kind: output, shape index: {}]  }
   0x1   :  { %s1310_s20 = smov 0  }
   0x2 LB: > { %s24_s21 = sadd.s32 1, %s1269_s19  ;;  %p1166_p0 = scmp.ge.s32.totalorder %s1273_s20, 1  ;;  %s1273_s20 = sphi %s1310_s20, %s15_s20   ;;  %s1269_s19 = sphi %s1308_s19, %s2006_s19   ;;  %s1265_s18 = sphi %s1306_s18, %s2005_s18  }
   0x3   : > { %p25_p1 = scmp.ge.s32.totalorder %s24_s21, 2  ;;  %p208_p2 = scmp.lt.s32.totalorder %s1273_s20, 3 }
   0x5   : > { %s2008_s21 = smov (%p25_p1, %s24_s21), 0  ;;  %p209_p3 = pnand %p1166_p0, %p208_p2 }
   0x6   : > { %p245_p4 = scmp.lt.s32.totalorder (!%p209_p3), %s1265_s18, 1 }
   0x7   : > { %212 = sbr.rel (%p209_p3) target bundleno = 620 (0x26c), region = 40 }
   0xc   : > { %v296_v0 = vld [vmem:[%s2001_s2 + $0x68] sm:$0xff]  ;;  %v1275_v1 = vmov 0   ;;  %v298_v2 = vld [vmem:[%s2001_s2 + $0x78] sm:$0xff]  ;;  %s2010_s18 = smov (!%p245_p4, %s1265_s18), 1  ;;  %v1339_v3 = vld [vmem:[%s2000_s1 + $0x40] sm:$0xff]  ;;  %vm379_vm0 = vcmask 64512  }
   0xd   : > { %1249 = vset.pattern.permute.xlu1 %v1275_v1  ;;  %1248 = vset.pattern.permute.xlu0 %v1275_v1  ;;  %s1221_s26 = smul.u32 24, %s2010_s18  ;;  %v295_v4 = vld [vmem:[%s2001_s2 + $0x60] sm:$0xff]  ;;  %v297_v7 = vld [vmem:[%s2001_s2 + $0x70] sm:$0xff]  ;;  %v1363_v10 = vld [vmem:[%s2000_s1 + $0x48] sm:$0xff]  ;;  %vm1028_vm1 = vcmask 359424  }
   0xe   : > { %366 = vperm.xlu1 %1249, %v296_v0   ;;  %376 = vperm.xlu0 %1248, %v298_v2   ;;  %v1354_v8 = vld [vmem:[%s2000_s1] sm:$0xff]  ;;  %v292_v12 = vld [vmem:[%s2001_s2 + $0x48] sm:$0xff]  ;;  %v1383_v14 = vld [vmem:[%s2000_s1 + $0x50] sm:$0xff]  ;;  %s1222_s28 = smul.u32 384, %s2010_s18 }
   0xf   : > { %1250 = vset.pattern.permute.xlu2 %v1275_v1  ;;  %s252_s29 = scalar_lea.vmem %s1999_s0, %s1221_s26  ;;  %v291_v11 = vld [vmem:[%s2001_s2 + $0x40] sm:$0xff]  ;;  %v268_v13 = vld [vmem:[%s2000_s1 + $0x8] sm:$0xff]  ;;  %v269_v15 = vld [vmem:[%s2000_s1 + $0x10] sm:$0xff] }
  0x10   : > { %v264_v5 = vld [vmem:[%s252_s29] sm:$0xff]  ;;  %v265_v6 = vld [vmem:[%s252_s29 + $0x8] sm:$0xff]  ;;  %v266_v9 = vld [vmem:[%s252_s29 + $0x10] sm:$0xff]  ;;  %s1831_s6 = scalar_lea.vmem %s2004_s5, %s1222_s28 }
  0x11   : > { %1219 = vmatpush.msra.mxu2 %v264_v5  ;;  %1220 = vmatpush.msra.mxu3 %v265_v6  ;;  %v294_v16 = vld [vmem:[%s2001_s2 + $0x58] sm:$0xff]  ;;  %v293_v19 = vld [vmem:[%s2001_s2 + $0x50] sm:$0xff]  ;;  %v1417_v20 = vld [vmem:[%s2000_s1 + $0x60] sm:$0xff] }
  0x12   : > { %1177 = vmatmul.msk.f32.vlgmr.msra.gmra.mxu2 %vm379_vm0, %v1339_v3  ;;  %1193 = vmatmul.msk.f32.vlgmr.msra.gmra.mxu3 %vm379_vm0, %v1339_v3  ;;  %v1400_v17 = vld [vmem:[%s2000_s1 + $0x58] sm:$0xff]  ;;  %v271_v21 = vld [vmem:[%s2000_s1 + $0x20] sm:$0xff]  ;;  %v289_v22 = vld [vmem:[%s2001_s2 + $0x30] sm:$0xff] }
  0x13   : > { %443 = vmatpush.msra.mxu0 %v264_v5  ;;  %508 = vmatpush.msra.mxu1 %v265_v6  ;;  %v270_v18 = vld [vmem:[%s2000_s1 + $0x18] sm:$0xff]  ;;  %v1434_v23 = vld [vmem:[%s2000_s1 + $0x68] sm:$0xff]  ;;  %v1451_v26 = vld [vmem:[%s2000_s1 + $0x70] sm:$0xff] }
  0x14   : > { %1169 = vmatmul.msk.f32.vlgmr.msra.gmra.mxu0 %vm379_vm0, %v1354_v8  ;;  %1185 = vmatmul.msk.f32.vlgmr.msra.gmra.mxu1 %vm379_vm0, %v1354_v8  ;;  %v272_v24 = vld [vmem:[%s2000_s1 + $0x28] sm:$0xff]  ;;  %v286_v25 = vld [vmem:[%s2001_s2 + $0x18] sm:$0xff]  ;;  %v273_v27 = vld [vmem:[%s2000_s1 + $0x30] sm:$0xff] }
  0x15   : > { %573 = vmatpush.msrb.mxu2 %v266_v9  ;;  %356 = vperm.xlu2 %1250, %v294_v16   ;;  %v283_v28 = vld [vmem:[%s2001_s2] sm:$0xff]  ;;  %v1468_v29 = vld [vmem:[%s2000_s1 + $0x78] sm:$0xff]  ;;  %v288_v31 = vld [vmem:[%s2001_s2 + $0x28] sm:$0xff] }
  0x16   : > { %361 = vperm.xlu1 %1249, %v295_v4   ;;  %371 = vperm.xlu0 %1248, %v297_v7   ;;  %v274_v30 = vld [vmem:[%s2000_s1 + $0x38] sm:$0xff]  ;;  %v285_v33 = vld [vmem:[%s2001_s2 + $0x10] sm:$0xff]  ;;  %v287_v34 = vld [vmem:[%s2001_s2 + $0x20] sm:$0xff] }
  0x17   : > { %v290_v32 = vld [vmem:[%s2001_s2 + $0x38] sm:$0xff]  ;;  %v284_v35 = vld [vmem:[%s2001_s2 + $0x8] sm:$0xff]  ;;  %v687_v36 = vld [vmem:[%s2003_s4] sm:$0xff] }
  0x18   : > { %v689_v37 = vld [vmem:[%s2003_s4 + $0x10] sm:$0xff]  ;;  %v690_v38 = vld [vmem:[%s2003_s4 + $0x18] sm:$0xff]  ;;  %v692_v41 = vld [vmem:[%s2003_s4 + $0x28] sm:$0xff] }
  0x19   : > { %v693_v44 = vld [vmem:[%s2003_s4 + $0x30] sm:$0xff]  ;;  %v695_v47 = vld [vmem:[%s2003_s4 + $0x40] sm:$0xff]  ;;  %v696_v50 = vld [vmem:[%s2003_s4 + $0x48] sm:$0xff] }
  0x1a   : > { %1178 = vmatmul.msk.f32.gmra.mxu2 %vm379_vm0, %v1363_v10  ;;  %1194 = vmatmul.msk.f32.gmra.mxu3 %vm379_vm0, %v1363_v10  ;;  %v698_v52 = vld [vmem:[%s2003_s4 + $0x58] sm:$0xff]  ;;  %v699_v57 = vld [vmem:[%s2003_s4 + $0x60] sm:$0xff]  ;;  %v688_v58 = vld [vmem:[%s2003_s4 + $0x8] sm:$0xff] }
  0x1b   : > { %v701_v59 = vld [vmem:[%s2003_s4 + $0x70] sm:$0xff]  ;;  %v702_v1 = vld [vmem:[%s2003_s4 + $0x78] sm:$0xff]  ;;  %v691_v2 = vld [vmem:[%s2003_s4 + $0x20] sm:$0xff] }
  0x1c   : > { %1170 = vmatmul.msk.f32.gmra.mxu0 %vm379_vm0, %v268_v13  ;;  %1186 = vmatmul.msk.f32.gmra.mxu1 %vm379_vm0, %v268_v13  ;;  %v694_v9 = vld [vmem:[%s2003_s4 + $0x38] sm:$0xff] }
  0x1d   : > { %351 = vperm.xlu2 %1250, %v293_v19  }
  0x1e   : > { %341 = vperm.xlu1 %1249, %v291_v11   ;;  %346 = vperm.xlu0 %1248, %v292_v12  }
  0x22   : > { %1179 = vmatmul.msk.f32.gmra.mxu2 %vm379_vm0, %v1383_v14  ;;  %1195 = vmatmul.msk.f32.gmra.mxu3 %vm379_vm0, %v1383_v14 }
  0x24   : > { %1171 = vmatmul.msk.f32.gmra.mxu0 %vm379_vm0, %v269_v15  ;;  %1187 = vmatmul.msk.f32.gmra.mxu1 %vm379_vm0, %v269_v15 }
  0x25   : > { %336 = vperm.xlu2 %1250, %v290_v32  }
  0x26   : > { %331 = vperm.xlu0 %1248, %v289_v22   ;;  %326 = vperm.xlu1 %1249, %v288_v31   ;;  %v700_v22 = vld [vmem:[%s2003_s4 + $0x68] sm:$0xff] }
  0x2a   : > { %1180 = vmatmul.msk.f32.gmra.mxu2 %vm379_vm0, %v1400_v17  ;;  %1196 = vmatmul.msk.f32.gmra.mxu3 %vm379_vm0, %v1400_v17 }
  0x2c   : > { %1172 = vmatmul.msk.f32.gmra.mxu0 %vm379_vm0, %v270_v18  ;;  %1188 = vmatmul.msk.f32.gmra.mxu1 %vm379_vm0, %v270_v18 }
  0x2d   : > { %321 = vperm.xlu2 %1250, %v287_v34  }
  0x2e   : > { %316 = vperm.xlu0 %1248, %v286_v25   ;;  %311 = vperm.xlu1 %1249, %v285_v33  }
  0x32   : > { %1181 = vmatmul.msk.f32.gmra.mxu2 %vm379_vm0, %v1417_v20  ;;  %1197 = vmatmul.msk.f32.gmra.mxu3 %vm379_vm0, %v1417_v20 }
  0x34   : > { %1173 = vmatmul.msk.f32.gmra.mxu0 %vm379_vm0, %v271_v21  ;;  %1189 = vmatmul.msk.f32.gmra.mxu1 %vm379_vm0, %v271_v21 }
  0x35   : > { %306 = vperm.xlu2 %1250, %v284_v35  }
  0x36   : > { %301 = vperm.xlu0 %1248, %v283_v28   ;;  %705 = vperm.xlu1 %1249, %v687_v36  }
  0x3a   : > { %1182 = vmatmul.msk.f32.gmra.mxu2 %vm379_vm0, %v1434_v23  ;;  %1198 = vmatmul.msk.f32.gmra.mxu3 %vm379_vm0, %v1434_v23 }
  0x3c   : > { %1174 = vmatmul.msk.f32.gmra.mxu0 %vm379_vm0, %v272_v24  ;;  %1190 = vmatmul.msk.f32.gmra.mxu1 %vm379_vm0, %v272_v24 }
  0x3d   : > { %710 = vperm.xlu2 %1250, %v688_v58  }
  0x3e   : > { %715 = vperm.xlu0 %1248, %v689_v37   ;;  %720 = vperm.xlu1 %1249, %v690_v38  }
  0x42   : > { %1183 = vmatmul.msk.f32.gmra.mxu2 %vm379_vm0, %v1451_v26  ;;  %1199 = vmatmul.msk.f32.gmra.mxu3 %vm379_vm0, %v1451_v26 }
  0x44   : > { %1175 = vmatmul.msk.f32.gmra.mxu0 %vm379_vm0, %v273_v27  ;;  %1191 = vmatmul.msk.f32.gmra.mxu1 %vm379_vm0, %v273_v27 }
  0x45   : > { %725 = vperm.xlu2 %1250, %v691_v2  }
  0x46   : > { %730 = vperm.xlu0 %1248, %v692_v41   ;;  %735 = vperm.xlu1 %1249, %v693_v44  }
  0x4a   : > { %1184 = vmatmul.msk.f32.gmra.mxu2 %vm379_vm0, %v1468_v29  ;;  %1200 = vmatmul.msk.f32.gmra.mxu3 %vm379_vm0, %v1468_v29 }
  0x4c   : > { %1176 = vmatmul.msk.f32.gmra.mxu0 %vm379_vm0, %v274_v30  ;;  %1192 = vmatmul.msk.f32.gmra.mxu1 %vm379_vm0, %v274_v30 }
  0x4d   : > { %740 = vperm.xlu2 %1250, %v694_v9  }
  0x4e   : > { %745 = vperm.xlu0 %1248, %v695_v47   ;;  %750 = vperm.xlu1 %1249, %v696_v50  }
  0x52   : > { %1201 = vmatmul.msk.f32.vlgmr.msrb.gmra.mxu2 %vm379_vm0, %v1354_v8 }
  0x56   : > { %760 = vperm.xlu0 %1248, %v698_v52   ;;  %765 = vperm.xlu1 %1249, %v699_v57  }
  0x5a   : > { %1202 = vmatmul.msk.f32.gmra.mxu2 %vm379_vm0, %v268_v13 }
  0x5e   : > { %775 = vperm.xlu0 %1248, %v701_v59   ;;  %780 = vperm.xlu1 %1249, %v702_v1  }
  0x62   : > { %1203 = vmatmul.msk.f32.gmra.mxu2 %vm379_vm0, %v269_v15  ;;  %v697_v15 = vld [vmem:[%s2003_s4 + $0x50] sm:$0xff] }
  0x63   : > { %755 = vperm.xlu2 %1250, %v697_v15  }
  0x6a   : > { %1204 = vmatmul.msk.f32.gmra.mxu2 %vm379_vm0, %v270_v18 }
  0x6b   : > { %770 = vperm.xlu2 %1250, %v700_v22  }
  0x72   : > { %1205 = vmatmul.msk.f32.gmra.mxu2 %vm379_vm0, %v271_v21 }
  0x7a   : > { %1206 = vmatmul.msk.f32.gmra.mxu2 %vm379_vm0, %v272_v24 }
  0x80   : > { %v1544_v51 = vpop.permute.xlu0 %376 }
  0x82   : > { %1207 = vmatmul.msk.f32.gmra.mxu2 %vm379_vm0, %v273_v27 }
  0x88   : > { %v1570_v60 = vpop.permute.xlu0 %371 }
  0x8a   : > { %1208 = vmatmul.msk.f32.gmra.mxu2 %vm379_vm0, %v274_v30 }
  0x90   : > { %v1586_v6 = vpop.permute.xlu0 %346 }
  0x91   : > { %v1514_v39 = vpop.f32.mrf.mxu0  ;;  %v1516_v40 = vpop.f32.mrf.mxu1 }
  0x92   : > { %1209 = vmatmul.msk.f32.gmra.mxu2 %vm379_vm0, %v1339_v3  ;;  %v1584_v3 = vpop.permute.xlu2 %356 }
  0x95   : > { %v1521_v42 = vpop.f32.mrf.mxu2  ;;  %v1523_v43 = vpop.f32.mrf.mxu3 }
  0x99   : > { %v1530_v45 = vpop.f32.mrf.mxu0  ;;  %v1532_v46 = vpop.f32.mrf.mxu1 }
  0x9a   : > { %1210 = vmatmul.msk.f32.gmra.mxu2 %vm379_vm0, %v1363_v10  ;;  %v1597_v10 = vpop.permute.xlu1 %366  ;;  %v1599_v13 = vpop.permute.xlu2 %351 }
  0x9d   : > { %v1537_v48 = vpop.f32.mrf.mxu2  ;;  %v1539_v49 = vpop.f32.mrf.mxu3 }
  0xa1   : > { %v1551_v53 = vpop.f32.mrf.mxu0  ;;  %v1553_v54 = vpop.f32.mrf.mxu1 }
  0xa2   : > { %1211 = vmatmul.msk.f32.gmra.mxu2 %vm379_vm0, %v1383_v14  ;;  %v1601_v14 = vpop.permute.xlu0 %331  ;;  %v1614_v21 = vpop.permute.xlu2 %336 }
  0xa5   : > { %v1555_v55 = vpop.f32.mrf.mxu2  ;;  %v1557_v56 = vpop.f32.mrf.mxu3 }
  0xa6   : > { %v541_v58 = vadd.f32 %v1557_v56, %v1599_v13 }
  0xa9   : > { %v1572_v63 = vpop.f32.mrf.mxu0  ;;  %v1574_v0 = vpop.f32.mrf.mxu1 }
  0xaa   : > { %1212 = vmatmul.msk.f32.gmra.mxu2 %vm379_vm0, %v1400_v17  ;;  %v1632_v41 = vpop.permute.xlu2 %321 }
  0xad   : > { %v478_v61 = vpop.f32.mrf.mxu2  ;;  %v543_v62 = vpop.f32.mrf.mxu3 }
  0xae   : > { %v544_v44 = vadd.f32 %v543_v62, %v1584_v3  ;;  %v479_v59 = vadd.f32 %v478_v61, %v1584_v3  ;;  %v538_v62 = vadd.f32 %v1539_v49, %v1586_v6  ;;  %v654_v49 = vmax.f32 %v541_v58, 0.0 }
  0xb0   : > { %v657_v9 = vmax.f32 %v544_v44, 0.0 }
  0xb1   : > { %v1588_v7 = vpop.f32.mrf.mxu0  ;;  %v1590_v8 = vpop.f32.mrf.mxu1 }
  0xb2   : > { %1213 = vmatmul.msk.f32.gmra.mxu2 %vm379_vm0, %v1417_v20  ;;  %v1612_v20 = vpop.permute.xlu1 %361 }
  0xb5   : > { %v481_v4 = vpop.f32.mrf.mxu2  ;;  %v546_v5 = vpop.f32.mrf.mxu3 }
  0xb6   : > { %v547_v34 = vadd.f32 %v546_v5, %v1612_v20  ;;  %v482_v47 = vadd.f32 %v481_v4, %v1612_v20  ;;  %v476_v4 = vadd.f32 %v1555_v55, %v1599_v13 }
  0xb8   : > { %v660_v1 = vmax.f32 %v547_v34, 0.0 }
  0xb9   : > { %v1608_v16 = vpop.f32.mrf.mxu0  ;;  %v1610_v17 = vpop.f32.mrf.mxu1 }
  0xba   : > { %1214 = vmatmul.msk.f32.gmra.mxu2 %vm379_vm0, %v1434_v23  ;;  %v1619_v23 = vpop.permute.xlu0 %316  ;;  %v1630_v38 = vpop.permute.xlu1 %341 }
  0xbb   : > { %v535_v15 = vadd.f32 %v1523_v43, %v1630_v38  ;;  %v470_v55 = vadd.f32 %v1521_v42, %v1630_v38 }
  0xbd   : > { %v484_v11 = vpop.f32.mrf.mxu2  ;;  %v549_v12 = vpop.f32.mrf.mxu3  ;;  %v647_v42 = vmax.f32 %v470_v55, 0.0 }
  0xbe   : > { %v550_v30 = vadd.f32 %v549_v12, %v1597_v10  ;;  %v485_v35 = vadd.f32 %v484_v11, %v1597_v10  ;;  %v659_v11 = vmax.f32 %v482_v47, 0.0 }
  0xc0   : > { %v663_v50 = vmax.f32 %v550_v30, 0.0  ;;  %v662_v2 = vmax.f32 %v485_v35, 0.0  ;;  %v307_v30 = vpop.permute.xlu2 %306 }
  0xc1   : > { %v463_v25 = vpop.f32.mrf.mxu0 }
  0xc2   : > { %1215 = vmatmul.msk.f32.gmra.mxu2 %vm379_vm0, %v1451_v26  ;;  %v528_v26 = vpop.f32.mrf.mxu1  ;;  %v1636_v57 = vpop.permute.xlu0 %301 }
  0xc3   : > { %v1654_v22 = vpop.permute.xlu1 %326 }
  0xc4   : > { %v461_v35 = vadd.f32 %v1608_v16, %v1654_v22  ;;  %v526_v44 = vadd.f32 %v1610_v17, %v1654_v22  ;;  %v455_v16 = vadd.f32 %v1572_v63, %v1619_v23  ;;  %v520_v17 = vadd.f32 %v1574_v0, %v1619_v23 }
  0xc5   : > { %v487_v18 = vpop.f32.mrf.mxu2  ;;  %v552_v19 = vpop.f32.mrf.mxu3  ;;  %v514_v0 = vadd.f32 %v1532_v46, %v307_v30 }
  0xc6   : > { %v553_v24 = vadd.f32 %v552_v19, %v1570_v60  ;;  %v488_v31 = vadd.f32 %v487_v18, %v1570_v60  ;;  %v473_v18 = vadd.f32 %v1537_v48, %v1586_v6  ;;  %v656_v19 = vmax.f32 %v479_v59, 0.0 }
  0xc7   : > { %v639_v58 = vmax.f32 %v526_v44, 0.0  ;;  %v633_v63 = vmax.f32 %v520_v17, 0.0  ;;  %v1768_v44 = vld [vmem:[%s2002_s3 + $0x50] sm:$0xff] }
  0xc8   : > { %v666_v36 = vmax.f32 %v553_v24, 0.0  ;;  %v665_v52 = vmax.f32 %v488_v31, 0.0  ;;  %v651_v24 = vmax.f32 %v538_v62, 0.0  ;;  %v648_v31 = vmax.f32 %v535_v15, 0.0 }
  0xc9   : > { %v466_v56 = vpop.f32.mrf.mxu0  ;;  %v650_v48 = vmax.f32 %v473_v18, 0.0  ;;  %v627_v15 = vmax.f32 %v514_v0, 0.0 }
  0xca   : > { %1216 = vmatmul.msk.f32.gmra.mxu2 %vm379_vm0, %v1468_v29  ;;  %v531_v61 = vpop.f32.mrf.mxu1 }
  0xcb   : > { %v532_v43 = vadd.f32 %v531_v61, %v1614_v21  ;;  %v312_v59 = vpop.permute.xlu1 %311 }
  0xcc   : > { %v517_v62 = vadd.f32 %v1553_v54, %v312_v59  ;;  %v511_v54 = vadd.f32 %v1516_v40, %v1636_v57 }
  0xcd   : > { %v490_v27 = vpop.f32.mrf.mxu2  ;;  %v555_v28 = vpop.f32.mrf.mxu3 }
  0xce   : > { %v491_v32 = vadd.f32 %v490_v27, %v1544_v51  ;;  %v556_v33 = vadd.f32 %v555_v28, %v1544_v51  ;;  %v653_v27 = vmax.f32 %v476_v4, 0.0  ;;  %v467_v28 = vadd.f32 %v466_v56, %v1614_v21 }
  0xcf   : > { %v630_v56 = vmax.f32 %v517_v62, 0.0 }
  0xd0   : > { %v668_v29 = vmax.f32 %v491_v32, 0.0  ;;  %v669_v37 = vmax.f32 %v556_v33, 0.0  ;;  %v464_v32 = vadd.f32 %v463_v25, %v1601_v14  ;;  %v529_v33 = vadd.f32 %v528_v26, %v1601_v14 }
  0xd1   : > { %v458_v26 = vadd.f32 %v1588_v7, %v1632_v41  ;;  %v452_v7 = vadd.f32 %v1551_v53, %v312_v59  ;;  %v446_v53 = vadd.f32 %v1514_v39, %v1636_v57  ;;  %v1690_v39 = vld [vmem:[%s2002_s3] sm:$0xff] }
  0xd2   : > { %783 = vmatpush.msrb.mxu3 %v668_v29  ;;  %848 = vmatpush.msrb.mxu0 %v669_v37  ;;  %v645_v29 = vmax.f32 %v532_v43, 0.0  ;;  %v641_v47 = vmax.f32 %v464_v32, 0.0  ;;  %v642_v25 = vmax.f32 %v529_v33, 0.0  ;;  %v1747_v33 = vld [vmem:[%s2002_s3 + $0x38] sm:$0xff] }
  0xd3   : > { %v623_v18 = vmax.f32 %v446_v53, 0.0 }
  0xd4   : > { %784 = vmatpush.msrb.mxu3 %v665_v52  ;;  %849 = vmatpush.msrb.mxu0 %v666_v36  ;;  %v644_v36 = vmax.f32 %v467_v28, 0.0  ;;  %v638_v52 = vmax.f32 %v461_v35, 0.0  ;;  %v1726_v28 = vld [vmem:[%s2002_s3 + $0x20] sm:$0xff] }
  0xd5   : > { %v575_v5 = vpop.f32.mrf.mxu2 }
  0xd6   : > { %v1646_v12 = vadd.f32 %v575_v5, %v1636_v57  ;;  %785 = vmatpush.msrb.mxu3 %v662_v2  ;;  %850 = vmatpush.msrb.mxu0 %v663_v50  ;;  %v523_v50 = vadd.f32 %v1590_v8, %v1632_v41  ;;  %v632_v5 = vmax.f32 %v455_v16, 0.0 }
  0xd8   : > { %786 = vmatpush.msrb.mxu3 %v659_v11  ;;  %851 = vmatpush.msrb.mxu0 %v660_v1  ;;  %v635_v1 = vmax.f32 %v458_v26, 0.0  ;;  %v636_v2 = vmax.f32 %v523_v50, 0.0  ;;  %v629_v11 = vmax.f32 %v452_v7, 0.0 }
  0xda   : > { %787 = vmatpush.msrb.mxu3 %v656_v19  ;;  %852 = vmatpush.msrb.mxu0 %v657_v9  ;;  %v449_v9 = vadd.f32 %v1530_v45, %v307_v30  ;;  %v624_v45 = vmax.f32 %v511_v54, 0.0 }
  0xdc   : > { %788 = vmatpush.msrb.mxu3 %v653_v27  ;;  %853 = vmatpush.msrb.mxu0 %v654_v49  ;;  %v626_v61 = vmax.f32 %v449_v9, 0.0  ;;  %v1719_v27 = vld [vmem:[%s2002_s3 + $0x18] sm:$0xff] }
  0xdd   : > { %v578_v34 = vpop.f32.mrf.mxu2 }
  0xde   : > { %v1662_v37 = vadd.f32 %v578_v34, %v307_v30  ;;  %789 = vmatpush.msrb.mxu3 %v650_v48  ;;  %854 = vmatpush.msrb.mxu0 %v651_v24  ;;  %v1710_v24 = vld [vmem:[%s2002_s3 + $0x10] sm:$0xff]  ;;  %v1733_v30 = vld [vmem:[%s2002_s3 + $0x28] sm:$0xff]  ;;  %v1754_v34 = vld [vmem:[%s2002_s3 + $0x40] sm:$0xff] }
  0xdf   : > { %v1740_v48 = vld [vmem:[%s2002_s3 + $0x30] sm:$0xff] }
  0xe0   : > { %790 = vmatpush.msrb.mxu3 %v647_v42  ;;  %855 = vmatpush.msrb.mxu0 %v648_v31  ;;  %v628_v54 = vmax.f32 %v1662_v37, 0.0 }
  0xe2   : > { %791 = vmatpush.msrb.mxu3 %v644_v36  ;;  %856 = vmatpush.msrb.mxu0 %v645_v29  ;;  %v1761_v36 = vld [vmem:[%s2002_s3 + $0x48] sm:$0xff] }
  0xe4   : > { %792 = vmatpush.msrb.mxu3 %v641_v47  ;;  %857 = vmatpush.msrb.mxu0 %v642_v25  ;;  %v1775_v25 = vld [vmem:[%s2002_s3 + $0x58] sm:$0xff] }
  0xe5   : > { %v581_v8 = vpop.f32.mrf.mxu2 }
  0xe6   : > { %v1676_v4 = vadd.f32 %v581_v8, %v312_v59  ;;  %793 = vmatpush.msrb.mxu3 %v638_v52  ;;  %858 = vmatpush.msrb.mxu0 %v639_v58  ;;  %v1784_v52 = vld [vmem:[%s2002_s3 + $0x60] sm:$0xff] }
  0xe8   : > { %794 = vmatpush.msrb.mxu3 %v635_v1  ;;  %859 = vmatpush.msrb.mxu0 %v636_v2  ;;  %v631_v53 = vmax.f32 %v1676_v4, 0.0 }
  0xea   : > { %795 = vmatpush.msrb.mxu3 %v632_v5  ;;  %860 = vmatpush.msrb.mxu0 %v633_v63 }
  0xec   : > { %796 = vmatpush.msrb.mxu3 %v629_v11  ;;  %861 = vmatpush.msrb.mxu0 %v630_v56  ;;  %v1816_v11 = vld [vmem:[%s2002_s3 + $0x78] sm:$0xff] }
  0xed   : > { %v584_v49 = vpop.f32.mrf.mxu2 }
  0xee   : > { %v1685_v46 = vadd.f32 %v584_v49, %v1619_v23  ;;  %797 = vmatpush.msrb.mxu3 %v626_v61  ;;  %862 = vmatpush.msrb.mxu0 %v627_v15  ;;  %v1700_v23 = vld [vmem:[%s2002_s3 + $0x8] sm:$0xff]  ;;  %v625_v61 = vmax.f32 %v1646_v12, 0.0  ;;  %v1825_v15 = vpop.permute.xlu1 %705  ;;  %v1836_v49 = vpop.permute.xlu2 %710 }
  0xf0   : > { %798 = vmatpush.msrb.mxu3 %v623_v18  ;;  %863 = vmatpush.msrb.mxu0 %v624_v45  ;;  %v634_v56 = vmax.f32 %v1685_v46, 0.0 }
  0xf1   : > { %799 = vmatmul.f32.vlgmr.msrb.gmra.mxu3 %v1690_v39  ;;  %864 = vmatmul.f32.vlgmr.msrb.gmra.mxu0 %v1690_v39 }
  0xf5   : > { %v587_v40 = vpop.f32.mrf.mxu2 }
  0xf6   : > { %v1695_v57 = vadd.f32 %v587_v40, %v1632_v41 }
  0xf9   : > { %802 = vmatmul.f32.gmra.mxu3 %v1700_v23  ;;  %867 = vmatmul.f32.gmra.mxu0 %v1700_v23 }
  0xfd   : > { %v590_v19 = vpop.f32.mrf.mxu2 }
  0xfe   : > { %v1705_v55 = vadd.f32 %v590_v19, %v1654_v22 }
 0x101   : > { %805 = vmatmul.f32.gmra.mxu3 %v1710_v24  ;;  %870 = vmatmul.f32.gmra.mxu0 %v1710_v24 }
 0x105   : > { %v1714_v41 = vpop.f32.mrf.mxu2 }
 0x106   : > { %v594_v63 = vadd.f32 %v1714_v41, %v1601_v14  ;;  %v637_v14 = vmax.f32 %v1695_v57, 0.0  ;;  %v1843_v41 = vpop.permute.xlu0 %715 }
 0x109   : > { %808 = vmatmul.f32.gmra.mxu3 %v1719_v27  ;;  %873 = vmatmul.f32.gmra.mxu0 %v1719_v27 }
 0x10d   : > { %v596_v22 = vpop.f32.mrf.mxu2 }
 0x111   : > { %811 = vmatmul.f32.gmra.mxu3 %v1726_v28  ;;  %876 = vmatmul.f32.gmra.mxu0 %v1726_v28 }
 0x115   : > { %v599_v43 = vpop.f32.mrf.mxu2 }
 0x119   : > { %814 = vmatmul.f32.gmra.mxu3 %v1733_v30  ;;  %879 = vmatmul.f32.gmra.mxu0 %v1733_v30 }
 0x11d   : > { %v602_v31 = vpop.f32.mrf.mxu2 }
 0x11e   : > { %v603_v62 = vadd.f32 %v602_v31, %v1586_v6  ;;  %v1807_v6 = vld [vmem:[%s2002_s3 + $0x70] sm:$0xff] }
 0x120   : > { %v652_v5 = vmax.f32 %v603_v62, 0.0 }
 0x121   : > { %817 = vmatmul.f32.gmra.mxu3 %v1740_v48  ;;  %882 = vmatmul.f32.gmra.mxu0 %v1740_v48 }
 0x125   : > { %v605_v32 = vpop.f32.mrf.mxu2 }
 0x129   : > { %820 = vmatmul.f32.gmra.mxu3 %v1747_v33  ;;  %885 = vmatmul.f32.gmra.mxu0 %v1747_v33 }
 0x12d   : > { %v608_v42 = vpop.f32.mrf.mxu2 }
 0x131   : > { %823 = vmatmul.f32.gmra.mxu3 %v1754_v34  ;;  %888 = vmatmul.f32.gmra.mxu0 %v1754_v34 }
 0x135   : > { %v611_v35 = vpop.f32.mrf.mxu2 }
 0x136   : > { %v612_v59 = vadd.f32 %v611_v35, %v1612_v20  ;;  %v1850_v35 = vpop.permute.xlu1 %720 }
 0x138   : > { %v661_v7 = vmax.f32 %v612_v59, 0.0 }
 0x139   : > { %826 = vmatmul.f32.gmra.mxu3 %v1761_v36  ;;  %891 = vmatmul.f32.gmra.mxu0 %v1761_v36 }
 0x13d   : > { %v614_v29 = vpop.f32.mrf.mxu2 }
 0x13e   : > { %v615_v58 = vadd.f32 %v614_v29, %v1597_v10  ;;  %v1795_v10 = vld [vmem:[%s2002_s3 + $0x68] sm:$0xff] }
 0x140   : > { %v664_v2 = vmax.f32 %v615_v58, 0.0  ;;  %v1857_v58 = vpop.permute.xlu2 %725 }
 0x141   : > { %829 = vmatmul.f32.gmra.mxu3 %v1768_v44  ;;  %894 = vmatmul.f32.gmra.mxu0 %v1768_v44 }
 0x145   : > { %v617_v47 = vpop.f32.mrf.mxu2 }
 0x146   : > { %v618_v50 = vadd.f32 %v617_v47, %v1570_v60  ;;  %v609_v60 = vadd.f32 %v608_v42, %v1584_v3  ;;  %v600_v3 = vadd.f32 %v599_v43, %v1630_v38  ;;  %v640_v38 = vmax.f32 %v1705_v55, 0.0 }
 0x148   : > { %v667_v1 = vmax.f32 %v618_v50, 0.0  ;;  %v658_v8 = vmax.f32 %v609_v60, 0.0  ;;  %v649_v9 = vmax.f32 %v600_v3, 0.0 }
 0x149   : > { %832 = vmatmul.f32.gmra.mxu3 %v1775_v25  ;;  %897 = vmatmul.f32.gmra.mxu0 %v1775_v25 }
 0x14d   : > { %v620_v26 = vpop.f32.mrf.mxu2 }
 0x14e   : > { %v621_v16 = vadd.f32 %v620_v26, %v1544_v51  ;;  %v606_v51 = vadd.f32 %v605_v32, %v1599_v13  ;;  %v597_v13 = vadd.f32 %v596_v22, %v1614_v21  ;;  %v643_v21 = vmax.f32 %v594_v63, 0.0 }
 0x150   : > { %v670_v17 = vmax.f32 %v621_v16, 0.0  ;;  %v655_v20 = vmax.f32 %v606_v51, 0.0  ;;  %v646_v0 = vmax.f32 %v597_v13, 0.0  ;;  %v1864_v51 = vpop.permute.xlu0 %730  ;;  %v1871_v13 = vpop.permute.xlu1 %735 }
 0x151   : > { %835 = vmatmul.f32.gmra.mxu3 %v1784_v52  ;;  %900 = vmatmul.f32.gmra.mxu0 %v1784_v52 }
 0x152   : > { %913 = vmatpush.msrb.mxu1 %v670_v17 }
 0x154   : > { %914 = vmatpush.msrb.mxu1 %v667_v1 }
 0x156   : > { %915 = vmatpush.msrb.mxu1 %v664_v2 }
 0x158   : > { %916 = vmatpush.msrb.mxu1 %v661_v7 }
 0x159   : > { %838 = vmatmul.f32.gmra.mxu3 %v1795_v10  ;;  %903 = vmatmul.f32.gmra.mxu0 %v1795_v10 }
 0x15a   : > { %917 = vmatpush.msrb.mxu1 %v658_v8 }
 0x15c   : > { %918 = vmatpush.msrb.mxu1 %v655_v20 }
 0x15e   : > { %919 = vmatpush.msrb.mxu1 %v652_v5 }
 0x160   : > { %920 = vmatpush.msrb.mxu1 %v649_v9 }
 0x161   : > { %841 = vmatmul.f32.gmra.mxu3 %v1807_v6  ;;  %906 = vmatmul.f32.gmra.mxu0 %v1807_v6 }
 0x162   : > { %921 = vmatpush.msrb.mxu1 %v646_v0 }
 0x164   : > { %922 = vmatpush.msrb.mxu1 %v643_v21 }
 0x166   : > { %923 = vmatpush.msrb.mxu1 %v640_v38  ;;  %v1878_v38 = vpop.permute.xlu2 %740 }
 0x168   : > { %924 = vmatpush.msrb.mxu1 %v637_v14 }
 0x169   : > { %844 = vmatmul.f32.gmra.mxu3 %v1816_v11  ;;  %909 = vmatmul.f32.gmra.mxu0 %v1816_v11 }
 0x16a   : > { %925 = vmatpush.msrb.mxu1 %v634_v56 }
 0x16c   : > { %926 = vmatpush.msrb.mxu1 %v631_v53 }
 0x16e   : > { %v865_v18 = vpop.f32.mrf.mxu0  ;;  %927 = vmatpush.msrb.mxu1 %v628_v54 }
 0x16f   : > { %v866_v45 = vadd.f32 %v865_v18, %v1825_v15  ;;  %v1885_v18 = vpop.permute.xlu0 %745 }
 0x170   : > { %928 = vmatpush.msrb.mxu1 %v625_v61 }
 0x171   : > { %v979_v4 = vmax.f32 %v866_v45, 0.0  ;;  %929 = vmatmul.f32.vlgmr.msrb.gmra.mxu1 %v1690_v39 }
 0x173   : > { %1027 = vst [vmem:[%s1831_s6 + $0x8] sm:$0xff] %v979_v4 }
 0x174   : > { %v800_v12 = vpop.f32.mrf.mxu3 }
 0x175   : > { %v801_v37 = vadd.f32 %v800_v12, %v1825_v15 }
 0x176   : > { %v868_v46 = vpop.f32.mrf.mxu0 }
 0x177   : > { %v978_v40 = vmax.f32 %v801_v37, 0.0  ;;  %v869_v57 = vadd.f32 %v868_v46, %v1836_v49 }
 0x179   : > { %1026 = vst [vmem:[%s1831_s6] sm:$0xff] %v978_v40  ;;  %v982_v19 = vmax.f32 %v869_v57, 0.0  ;;  %932 = vmatmul.f32.gmra.mxu1 %v1700_v23  ;;  %v1892_v40 = vpop.permute.xlu1 %750 }
 0x17b   : > { %1031 = vst [vmem:[%s1831_s6 + $0x20] sm:$0xff] %v982_v19 }
 0x17c   : > { %v803_v55 = vpop.f32.mrf.mxu3 }
 0x17d   : > { %v804_v39 = vadd.f32 %v803_v55, %v1836_v49 }
 0x17e   : > { %v871_v22 = vpop.f32.mrf.mxu0 }
 0x17f   : > { %v981_v43 = vmax.f32 %v804_v39, 0.0  ;;  %v872_v31 = vadd.f32 %v871_v22, %v1843_v41 }
 0x181   : > { %1030 = vst [vmem:[%s1831_s6 + $0x18] sm:$0xff] %v981_v43  ;;  %v985_v32 = vmax.f32 %v872_v31, 0.0  ;;  %935 = vmatmul.f32.gmra.mxu1 %v1710_v24  ;;  %v1899_v43 = vpop.permute.xlu2 %755 }
 0x183   : > { %1034 = vst [vmem:[%s1831_s6 + $0x38] sm:$0xff] %v985_v32 }
 0x184   : > { %v806_v42 = vpop.f32.mrf.mxu3 }
 0x185   : > { %v807_v23 = vadd.f32 %v806_v42, %v1843_v41 }
 0x186   : > { %v874_v29 = vpop.f32.mrf.mxu0 }
 0x187   : > { %v984_v47 = vmax.f32 %v807_v23, 0.0  ;;  %v875_v26 = vadd.f32 %v874_v29, %v1850_v35 }
 0x189   : > { %1033 = vst [vmem:[%s1831_s6 + $0x30] sm:$0xff] %v984_v47  ;;  %v988_v50 = vmax.f32 %v875_v26, 0.0  ;;  %938 = vmatmul.f32.gmra.mxu1 %v1719_v27  ;;  %v1906_v47 = vpop.permute.xlu0 %760 }
 0x18b   : > { %1037 = vst [vmem:[%s1831_s6 + $0x50] sm:$0xff] %v988_v50 }
 0x18c   : > { %v809_v16 = vpop.f32.mrf.mxu3 }
 0x18d   : > { %v810_v24 = vadd.f32 %v809_v16, %v1850_v35 }
 0x18e   : > { %v877_v17 = vpop.f32.mrf.mxu0 }
 0x18f   : > { %v987_v59 = vmax.f32 %v810_v24, 0.0  ;;  %v878_v1 = vadd.f32 %v877_v17, %v1857_v58 }
 0x191   : > { %1036 = vst [vmem:[%s1831_s6 + $0x48] sm:$0xff] %v987_v59  ;;  %v991_v60 = vmax.f32 %v878_v1, 0.0  ;;  %941 = vmatmul.f32.gmra.mxu1 %v1726_v28  ;;  %v1913_v59 = vpop.permute.xlu1 %765 }
 0x193   : > { %1040 = vst [vmem:[%s1831_s6 + $0x68] sm:$0xff] %v991_v60 }
 0x194   : > { %v812_v2 = vpop.f32.mrf.mxu3 }
 0x195   : > { %v813_v27 = vadd.f32 %v812_v2, %v1857_v58 }
 0x196   : > { %v880_v7 = vpop.f32.mrf.mxu0 }
 0x197   : > { %v990_v62 = vmax.f32 %v813_v27, 0.0  ;;  %v881_v8 = vadd.f32 %v880_v7, %v1864_v51 }
 0x199   : > { %1039 = vst [vmem:[%s1831_s6 + $0x60] sm:$0xff] %v990_v62  ;;  %v994_v3 = vmax.f32 %v881_v8, 0.0  ;;  %944 = vmatmul.f32.gmra.mxu1 %v1733_v30  ;;  %v1920_v62 = vpop.permute.xlu2 %770 }
 0x19b   : > { %1043 = vst [vmem:[%s1831_s6 + $0x80] sm:$0xff] %v994_v3 }
 0x19c   : > { %v815_v20 = vpop.f32.mrf.mxu3 }
 0x19d   : > { %v816_v28 = vadd.f32 %v815_v20, %v1864_v51 }
 0x19e   : > { %v883_v5 = vpop.f32.mrf.mxu0 }
 0x19f   : > { %v993_v63 = vmax.f32 %v816_v28, 0.0  ;;  %v884_v9 = vadd.f32 %v883_v5, %v1871_v13 }
 0x1a1   : > { %1042 = vst [vmem:[%s1831_s6 + $0x78] sm:$0xff] %v993_v63  ;;  %v997_v0 = vmax.f32 %v884_v9, 0.0  ;;  %947 = vmatmul.f32.gmra.mxu1 %v1740_v48  ;;  %v1927_v63 = vpop.permute.xlu0 %775 }
 0x1a3   : > { %1046 = vst [vmem:[%s1831_s6 + $0x98] sm:$0xff] %v997_v0 }
 0x1a4   : > { %v818_v21 = vpop.f32.mrf.mxu3 }
 0x1a5   : > { %v819_v30 = vadd.f32 %v818_v21, %v1871_v13 }
 0x1a6   : > { %v886_v14 = vpop.f32.mrf.mxu0 }
 0x1a7   : > { %v996_v56 = vmax.f32 %v819_v30, 0.0  ;;  %v887_v53 = vadd.f32 %v886_v14, %v1878_v38 }
 0x1a9   : > { %1045 = vst [vmem:[%s1831_s6 + $0x90] sm:$0xff] %v996_v56  ;;  %v1000_v54 = vmax.f32 %v887_v53, 0.0  ;;  %950 = vmatmul.f32.gmra.mxu1 %v1747_v33  ;;  %v1934_v56 = vpop.permute.xlu1 %780 }
 0x1ab   : > { %1049 = vst [vmem:[%s1831_s6 + $0xb0] sm:$0xff] %v1000_v54 }
 0x1ac   : > { %v821_v61 = vpop.f32.mrf.mxu3 }
 0x1ad   : > { %v822_v48 = vadd.f32 %v821_v61, %v1878_v38 }
 0x1ae   : > { %v889_v45 = vpop.f32.mrf.mxu0 }
 0x1af   : > { %v999_v4 = vmax.f32 %v822_v48, 0.0  ;;  %v890_v12 = vadd.f32 %v889_v45, %v1885_v18 }
 0x1b1   : > { %1048 = vst [vmem:[%s1831_s6 + $0xa8] sm:$0xff] %v999_v4  ;;  %v1003_v37 = vmax.f32 %v890_v12, 0.0  ;;  %953 = vmatmul.f32.gmra.mxu1 %v1754_v34 }
 0x1b3   : > { %1052 = vst [vmem:[%s1831_s6 + $0xc8] sm:$0xff] %v1003_v37 }
 0x1b4   : > { %v824_v46 = vpop.f32.mrf.mxu3 }
 0x1b5   : > { %v825_v33 = vadd.f32 %v824_v46, %v1885_v18 }
 0x1b6   : > { %v892_v57 = vpop.f32.mrf.mxu0 }
 0x1b7   : > { %v1002_v19 = vmax.f32 %v825_v33, 0.0  ;;  %v893_v55 = vadd.f32 %v892_v57, %v1892_v40 }
 0x1b9   : > { %1051 = vst [vmem:[%s1831_s6 + $0xc0] sm:$0xff] %v1002_v19  ;;  %v1006_v39 = vmax.f32 %v893_v55, 0.0  ;;  %956 = vmatmul.f32.gmra.mxu1 %v1761_v36 }
 0x1bb   : > { %1055 = vst [vmem:[%s1831_s6 + $0xe0] sm:$0xff] %v1006_v39 }
 0x1bc   : > { %v827_v22 = vpop.f32.mrf.mxu3 }
 0x1bd   : > { %v828_v34 = vadd.f32 %v827_v22, %v1892_v40 }
 0x1be   : > { %v895_v31 = vpop.f32.mrf.mxu0 }
 0x1bf   : > { %v1005_v32 = vmax.f32 %v828_v34, 0.0  ;;  %v896_v42 = vadd.f32 %v895_v31, %v1899_v43 }
 0x1c1   : > { %1054 = vst [vmem:[%s1831_s6 + $0xd8] sm:$0xff] %v1005_v32  ;;  %v1009_v23 = vmax.f32 %v896_v42, 0.0  ;;  %959 = vmatmul.f32.gmra.mxu1 %v1768_v44 }
 0x1c3   : > { %1058 = vst [vmem:[%s1831_s6 + $0xf8] sm:$0xff] %v1009_v23 }
 0x1c4   : > { %v830_v29 = vpop.f32.mrf.mxu3 }
 0x1c5   : > { %v831_v36 = vadd.f32 %v830_v29, %v1899_v43 }
 0x1c6   : > { %v898_v26 = vpop.f32.mrf.mxu0 }
 0x1c7   : > { %v1008_v50 = vmax.f32 %v831_v36, 0.0  ;;  %v899_v16 = vadd.f32 %v898_v26, %v1906_v47 }
 0x1c9   : > { %1057 = vst [vmem:[%s1831_s6 + $0xf0] sm:$0xff] %v1008_v50  ;;  %v1012_v24 = vmax.f32 %v899_v16, 0.0  ;;  %962 = vmatmul.f32.gmra.mxu1 %v1775_v25 }
 0x1cb   : > { %1061 = vst [vmem:[%s1831_s6 + $0x110] sm:$0xff] %v1012_v24 }
 0x1cc   : > { %v833_v17 = vpop.f32.mrf.mxu3 }
 0x1cd   : > { %v834_v44 = vadd.f32 %v833_v17, %v1906_v47 }
 0x1ce   : > { %v901_v1 = vpop.f32.mrf.mxu0 }
 0x1cf   : > { %v1011_v60 = vmax.f32 %v834_v44, 0.0  ;;  %v902_v2 = vadd.f32 %v901_v1, %v1913_v59 }
 0x1d1   : > { %1060 = vst [vmem:[%s1831_s6 + $0x108] sm:$0xff] %v1011_v60  ;;  %v1015_v27 = vmax.f32 %v902_v2, 0.0  ;;  %965 = vmatmul.f32.gmra.mxu1 %v1784_v52 }
 0x1d3   : > { %1064 = vst [vmem:[%s1831_s6 + $0x128] sm:$0xff] %v1015_v27 }
 0x1d4   : > { %v836_v7 = vpop.f32.mrf.mxu3 }
 0x1d5   : > { %v837_v25 = vadd.f32 %v836_v7, %v1913_v59 }
 0x1d6   : > { %v904_v8 = vpop.f32.mrf.mxu0 }
 0x1d7   : > { %v1014_v3 = vmax.f32 %v837_v25, 0.0  ;;  %v905_v20 = vadd.f32 %v904_v8, %v1920_v62 }
 0x1d9   : > { %1063 = vst [vmem:[%s1831_s6 + $0x120] sm:$0xff] %v1014_v3  ;;  %v1018_v28 = vmax.f32 %v905_v20, 0.0  ;;  %968 = vmatmul.f32.gmra.mxu1 %v1795_v10 }
 0x1db   : > { %1067 = vst [vmem:[%s1831_s6 + $0x140] sm:$0xff] %v1018_v28 }
 0x1dc   : > { %v839_v5 = vpop.f32.mrf.mxu3 }
 0x1dd   : > { %v840_v52 = vadd.f32 %v839_v5, %v1920_v62 }
 0x1de   : > { %v907_v9 = vpop.f32.mrf.mxu0 }
 0x1df   : > { %v1017_v0 = vmax.f32 %v840_v52, 0.0  ;;  %v908_v21 = vadd.f32 %v907_v9, %v1927_v63 }
 0x1e1   : > { %1066 = vst [vmem:[%s1831_s6 + $0x138] sm:$0xff] %v1017_v0  ;;  %v1021_v30 = vmax.f32 %v908_v21, 0.0  ;;  %971 = vmatmul.f32.gmra.mxu1 %v1807_v6 }
 0x1e3   : > { %1070 = vst [vmem:[%s1831_s6 + $0x158] sm:$0xff] %v1021_v30 }
 0x1e4   : > { %v842_v14 = vpop.f32.mrf.mxu3 }
 0x1e5   : > { %v843_v10 = vadd.f32 %v842_v14, %v1927_v63 }
 0x1e6   : > { %v910_v53 = vpop.f32.mrf.mxu0 }
 0x1e7   : > { %v1020_v54 = vmax.f32 %v843_v10, 0.0  ;;  %v911_v61 = vadd.f32 %v910_v53, %v1934_v56 }
 0x1e9   : > { %1069 = vst [vmem:[%s1831_s6 + $0x150] sm:$0xff] %v1020_v54  ;;  %v1024_v48 = vmax.f32 %v911_v61, 0.0  ;;  %974 = vmatmul.f32.gmra.mxu1 %v1816_v11 }
 0x1eb   : > { %1073 = vst [vmem:[%s1831_s6 + $0x170] sm:$0xff] %v1024_v48 }
 0x1ec   : > { %v845_v45 = vpop.f32.mrf.mxu3 }
 0x1ed   : > { %v846_v6 = vadd.f32 %v845_v45, %v1934_v56 }
 0x1ee   : > { %v930_v4 = vpop.f32.mrf.mxu1 }
 0x1ef   : > { %v1023_v12 = vmax.f32 %v846_v6, 0.0  ;;  %v931_v37 = vadd.f32 %v930_v4, %v1825_v15 }
 0x1f1   : > { %1072 = vst [vmem:[%s1831_s6 + $0x168] sm:$0xff] %v1023_v12  ;;  %v980_v46 = vmax.f32 %v931_v37, 0.0 }
 0x1f3   : > { %1029 = vst.msk [vmem:[%s1831_s6 + $0x10] sm:$0xff] %vm1028_vm1, %v980_v46 }
 0x1f6   : > { %v933_v33 = vpop.f32.mrf.mxu1 }
 0x1f7   : > { %v934_v57 = vadd.f32 %v933_v33, %v1836_v49 }
 0x1f9   : > { %v983_v11 = vmax.f32 %v934_v57, 0.0 }
 0x1fb   : > { %1032 = vst.msk [vmem:[%s1831_s6 + $0x28] sm:$0xff] %vm1028_vm1, %v983_v11 }
 0x1fe   : > { %v936_v19 = vpop.f32.mrf.mxu1 }
 0x1ff   : > { %v937_v55 = vadd.f32 %v936_v19, %v1843_v41 }
 0x201   : > { %v986_v39 = vmax.f32 %v937_v55, 0.0 }
 0x203   : > { %1035 = vst.msk [vmem:[%s1831_s6 + $0x40] sm:$0xff] %vm1028_vm1, %v986_v39 }
 0x206   : > { %v939_v15 = vpop.f32.mrf.mxu1 }
 0x207   : > { %v940_v22 = vadd.f32 %v939_v15, %v1850_v35 }
 0x209   : > { %v989_v34 = vmax.f32 %v940_v22, 0.0 }
 0x20b   : > { %1038 = vst.msk [vmem:[%s1831_s6 + $0x58] sm:$0xff] %vm1028_vm1, %v989_v34 }
 0x20e   : > { %v942_v31 = vpop.f32.mrf.mxu1 }
 0x20f   : > { %v943_v49 = vadd.f32 %v942_v31, %v1857_v58 }
 0x211   : > { %v992_v32 = vmax.f32 %v943_v49, 0.0 }
 0x213   : > { %1041 = vst.msk [vmem:[%s1831_s6 + $0x70] sm:$0xff] %vm1028_vm1, %v992_v32 }
 0x216   : > { %v945_v42 = vpop.f32.mrf.mxu1 }
 0x217   : > { %v946_v41 = vadd.f32 %v945_v42, %v1864_v51 }
 0x219   : > { %v995_v23 = vmax.f32 %v946_v41, 0.0 }
 0x21b   : > { %1044 = vst.msk [vmem:[%s1831_s6 + $0x88] sm:$0xff] %vm1028_vm1, %v995_v23 }
 0x21e   : > { %v948_v29 = vpop.f32.mrf.mxu1 }
 0x21f   : > { %v949_v35 = vadd.f32 %v948_v29, %v1871_v13 }
 0x221   : > { %v998_v36 = vmax.f32 %v949_v35, 0.0 }
 0x223   : > { %1047 = vst.msk [vmem:[%s1831_s6 + $0xa0] sm:$0xff] %vm1028_vm1, %v998_v36 }
 0x226   : > { %v951_v26 = vpop.f32.mrf.mxu1 }
 0x227   : > { %v952_v58 = vadd.f32 %v951_v26, %v1878_v38 }
 0x229   : > { %v1001_v50 = vmax.f32 %v952_v58, 0.0 }
 0x22b   : > { %1050 = vst.msk [vmem:[%s1831_s6 + $0xb8] sm:$0xff] %vm1028_vm1, %v1001_v50 }
 0x22e   : > { %v954_v16 = vpop.f32.mrf.mxu1 }
 0x22f   : > { %v955_v51 = vadd.f32 %v954_v16, %v1885_v18 }
 0x231   : > { %v1004_v24 = vmax.f32 %v955_v51, 0.0 }
 0x233   : > { %1053 = vst.msk [vmem:[%s1831_s6 + $0xd0] sm:$0xff] %vm1028_vm1, %v1004_v24 }
 0x236   : > { %v957_v17 = vpop.f32.mrf.mxu1 }
 0x237   : > { %v958_v13 = vadd.f32 %v957_v17, %v1892_v40 }
 0x239   : > { %v1007_v44 = vmax.f32 %v958_v13, 0.0 }
 0x23b   : > { %1056 = vst.msk [vmem:[%s1831_s6 + $0xe8] sm:$0xff] %vm1028_vm1, %v1007_v44 }
 0x23e   : > { %v960_v1 = vpop.f32.mrf.mxu1 }
 0x23f   : > { %v961_v38 = vadd.f32 %v960_v1, %v1899_v43 }
 0x241   : > { %v1010_v60 = vmax.f32 %v961_v38, 0.0 }
 0x243   : > { %1059 = vst.msk [vmem:[%s1831_s6 + $0x100] sm:$0xff] %vm1028_vm1, %v1010_v60 }
 0x246   : > { %v963_v2 = vpop.f32.mrf.mxu1 }
 0x247   : > { %v964_v18 = vadd.f32 %v963_v2, %v1906_v47 }
 0x249   : > { %v1013_v27 = vmax.f32 %v964_v18, 0.0 }
 0x24b   : > { %1062 = vst.msk [vmem:[%s1831_s6 + $0x118] sm:$0xff] %vm1028_vm1, %v1013_v27 }
 0x24e   : > { %v966_v7 = vpop.f32.mrf.mxu1 }
 0x24f   : > { %v967_v40 = vadd.f32 %v966_v7, %v1913_v59 }
 0x251   : > { %v1016_v25 = vmax.f32 %v967_v40, 0.0 }
 0x253   : > { %1065 = vst.msk [vmem:[%s1831_s6 + $0x130] sm:$0xff] %vm1028_vm1, %v1016_v25 }
 0x256   : > { %v969_v8 = vpop.f32.mrf.mxu1 }
 0x257   : > { %v970_v43 = vadd.f32 %v969_v8, %v1920_v62 }
 0x259   : > { %v1019_v3 = vmax.f32 %v970_v43, 0.0 }
 0x25b   : > { %1068 = vst.msk [vmem:[%s1831_s6 + $0x148] sm:$0xff] %vm1028_vm1, %v1019_v3 }
 0x25e   : > { %v972_v20 = vpop.f32.mrf.mxu1 }
 0x25f   : > { %v973_v28 = vadd.f32 %v972_v20, %v1927_v63 }
 0x261   : > { %v1022_v47 = vmax.f32 %v973_v28, 0.0 }
 0x263   : > { %1071 = vst.msk [vmem:[%s1831_s6 + $0x160] sm:$0xff] %vm1028_vm1, %v1022_v47 }
 0x266   : > { %v975_v5 = vpop.f32.mrf.mxu1 }
 0x267   : > { %v976_v52 = vadd.f32 %v975_v5, %v1934_v56 }
 0x269   : > { %v1025_v9 = vmax.f32 %v976_v52, 0.0 }
 0x26b   : > { %1074 = vst.msk [vmem:[%s1831_s6 + $0x178] sm:$0xff] %vm1028_vm1, %v1025_v9 }
 0x26c PF: > { %s15_s20 = sadd.s32 1, %s1273_s20   ;;  %s2005_s18 = smov %s1269_s19 }
 0x26d   : > { %p12_p5 = scmp.ge.s32.totalorder %s15_s20, 4   ;;  %s2006_s19 = smov %s2008_s21 }
 0x26f   :  { %14 = sbr.rel (!%p12_p5) target bundleno = 2 (0x2), region = 70 }

</bundles_post_ra>
